<compile_context>
chip_gen: v6e
topology: v6e:2x2x1
jax: 0.10.0
libtpu: 0.0.40
codegen_flags: <defaults>
</compile_context>

<pallas_src>
import jax
import jax.numpy as jnp
from jax.experimental import pallas as pl
from jax.experimental.pallas import tpu as pltpu

_LANE = 128     # TPU vreg lane width; pad the output-feature dim to this.
_SUBLANE = 8    # TPU vreg sublane count; bias replicated to one full tile.


def classifier_kernel(x_ref, w_ref, b_ref, o_ref):
    # x_ref: (B, H)   w_ref: (H, O_pad)   b_ref: (8, O_pad)   o_ref: (B, O_pad)
    x = x_ref[...]
    w = w_ref[...]
    if w.dtype != x.dtype:
        # bf16 weight path: feed the MXU matched bf16 operands, accumulate f32.
        x = x.astype(w.dtype)

    # Lane-dense, MXU-canonical (B,H)@(H,O_pad) contraction; f32 accumulate.
    logits = jnp.dot(x, w, preferred_element_type=jnp.float32)

    bias = b_ref[...].astype(jnp.float32)
    if bias.shape[0] == logits.shape[0]:
        logits = logits + bias                 # plain VPU add (no broadcast)
    else:
        logits = logits + bias[0:1, :]         # sublane broadcast fallback

    # Exact, numerically stable sigmoid via tanh (single EUP op):
    #   sigmoid(x) = 0.5 * (tanh(x/2) + 1)
    out = 0.5 * (jnp.tanh(0.5 * logits) + 1.0)
    o_ref[...] = out.astype(o_ref.dtype)


def prepare_classifier_params(weight, bias, lane=_LANE, param_dtype=None):
    """One-time parameter layout:
       * transpose weight (O, H) -> (H, O_pad), zero-padding O to a multiple
         of 128 so the matmul operand and the output are lane-dense,
       * replicate bias across 8 sublanes (one full VMEM tile, free),
       * optionally store the weight in bf16 for the MXU-native path."""
    out_features, hidden_size = weight.shape
    o_pad = max(lane, ((out_features + lane - 1) // lane) * lane)
    w_dtype = param_dtype if param_dtype is not None else weight.dtype

    w_t = jnp.zeros((hidden_size, o_pad), w_dtype)
    w_t = w_t.at[:, :out_features].set(weight.T.astype(w_dtype))

    b_row = jnp.zeros((o_pad,), bias.dtype).at[:out_features].set(bias)
    b_pad = jnp.broadcast_to(b_row[None, :], (_SUBLANE, o_pad))
    return w_t, b_pad


def classifier_forward(hidden, weight_t_padded, bias_padded, out_features,
                       dropout_rate=0.0, return_padded=False):
    """hidden: (B, H); weight_t_padded: (H, O_pad); bias_padded: (8, O_pad)."""
    if dropout_rate != 0.0:
        raise NotImplementedError("dropout_rate > 0 is not supported")

    B, H = hidden.shape
    H_w, O_pad = weight_t_padded.shape
    assert H == H_w, (H, H_w)

    x_bytes = jnp.dtype(hidden.dtype).itemsize
    w_bytes = jnp.dtype(weight_t_padded.dtype).itemsize
    cost = pl.CostEstimate(
        flops=2 * B * H * O_pad,
        transcendentals=B * O_pad,  # one tanh per output element
        bytes_accessed=(x_bytes * B * H + w_bytes * H * O_pad
                        + x_bytes * _SUBLANE * O_pad + x_bytes * B * O_pad),
    )

    out_padded = pl.pallas_call(
        classifier_kernel,
        out_shape=jax.ShapeDtypeStruct((B, O_pad), hidden.dtype),
        # Grid-less: whole problem fits a single VMEM tile; one invocation,
        # zero grid-loop / pipelining overhead at these shapes.
        in_specs=[
            pl.BlockSpec(memory_space=pltpu.MemorySpace.VMEM),  # hidden (B, H)
            pl.BlockSpec(memory_space=pltpu.MemorySpace.VMEM),  # weight (H, O_pad)
            pl.BlockSpec(memory_space=pltpu.MemorySpace.VMEM),  # bias (8, O_pad)
        ],
        out_specs=pl.BlockSpec(memory_space=pltpu.MemorySpace.VMEM),
        cost_estimate=cost,
    )(hidden, weight_t_padded, bias_padded)

    if return_padded:
        # Hot-path option: padded columns hold sigmoid(0)=0.5; consumers must
        # ignore columns >= out_features.
        return out_padded
    return out_padded[:, :out_features]


if __name__ == "__main__":
    # Small shapes consistent with the module: batch=8, hidden=32, output=16.
    B, HIDDEN, OUT = 8, 32, 16

    key = jax.random.PRNGKey(0)
    k_x, k_w, k_b = jax.random.split(key, 3)

    hidden = jax.random.normal(k_x, (B, HIDDEN), dtype=jnp.float32)
    # Deterministic parameter init (nn.Linear-like uniform bound 1/sqrt(H)).
    bound = 1.0 / jnp.sqrt(jnp.float32(HIDDEN))
    weight = jax.random.uniform(k_w, (OUT, HIDDEN), jnp.float32, -bound, bound)
    bias = jax.random.uniform(k_b, (OUT,), jnp.float32, -bound, bound)

    # One-time lane-dense / MXU-canonical parameter layout (f32 for the test;
    # pass param_dtype=jnp.bfloat16 for the bf16 MXU path at larger shapes).
    w_t_pad, b_pad = prepare_classifier_params(weight, bias)

    out = classifier_forward(hidden, w_t_pad, b_pad, OUT, dropout_rate=0.0)
    out = jax.block_until_ready(out)

    # Reference check in plain JAX.
    ref = jax.nn.sigmoid(hidden @ weight.T + bias)
    assert out.shape == (B, OUT)
    assert jnp.allclose(out, ref, atol=1e-5, rtol=1e-5), (
        float(jnp.max(jnp.abs(out - ref))))

    print("KERNEL_OK")
</pallas_src>

<mosaic_0001>
module attributes {stable_mosaic.version = 11 : i64} {
  func.func @classifier_kernel(%arg0: memref<8x32xf32, #tpu.memory_space<vmem>>, %arg1: memref<32x128xf32, #tpu.memory_space<vmem>>, %arg2: memref<8x128xf32, #tpu.memory_space<vmem>>, %arg3: memref<8x128xf32, #tpu.memory_space<vmem>>) attributes {dimension_semantics = [], scalar_prefetch = 0 : i64, scratch_operands = 0 : i64, tpu.core_type = #tpu.core_type<tc>} {
    %c0 = arith.constant 0 : index
    %c0_0 = arith.constant 0 : index
    %0 = vector.load %arg0[%c0, %c0_0] : memref<8x32xf32, #tpu.memory_space<vmem>>, vector<8x32xf32>
    %c0_1 = arith.constant 0 : index
    %c0_2 = arith.constant 0 : index
    %1 = vector.load %arg1[%c0_1, %c0_2] : memref<32x128xf32, #tpu.memory_space<vmem>>, vector<32x128xf32>
    %cst = arith.constant dense<0.000000e+00> : vector<8x128xf32>
    %2 = tpu.matmul %0, %1, %cst {dimension_numbers = #tpu.dot_dimension_numbers<[1], [0], [0], [1], [0, 0, 1, 1], [], []>} : vector<8x32xf32>, vector<32x128xf32>, vector<8x128xf32> -> vector<8x128xf32>
    %c0_3 = arith.constant 0 : index
    %c0_4 = arith.constant 0 : index
    %3 = vector.load %arg2[%c0_3, %c0_4] : memref<8x128xf32, #tpu.memory_space<vmem>>, vector<8x128xf32>
    %4 = arith.addf %2, %3 : vector<8x128xf32>
    %cst_5 = arith.constant 5.000000e-01 : f32
    %5 = vector.broadcast %cst_5 : f32 to vector<8x128xf32>
    %6 = arith.mulf %5, %4 : vector<8x128xf32>
    %7 = math.tanh %6 : vector<8x128xf32>
    %cst_6 = arith.constant 1.000000e+00 : f32
    %8 = vector.broadcast %cst_6 : f32 to vector<8x128xf32>
    %9 = arith.addf %7, %8 : vector<8x128xf32>
    %cst_7 = arith.constant 5.000000e-01 : f32
    %10 = vector.broadcast %cst_7 : f32 to vector<8x128xf32>
    %11 = arith.mulf %10, %9 : vector<8x128xf32>
    %c0_8 = arith.constant 0 : index
    %c0_9 = arith.constant 0 : index
    %12 = vector.load %arg3[%c0_8, %c0_9] : memref<8x128xf32, #tpu.memory_space<vmem>>, vector<8x128xf32>
    tpu.vector_store %arg3[%c0_8, %c0_9], %11 {strides = array<i32>} : memref<8x128xf32, #tpu.memory_space<vmem>>, vector<8x128xf32>,
    return
  }
}

</mosaic_0001>

<bundles_post_ra>
// kernel: tpu_custom_call.1
= control target key start
LH: loop header
LB: loop body
LE: loop exit
PB: predicated region body
PF: predicated region fallthrough
CT: control target
= control target key end

     0   :  { %8 = vsyncpa [#allocation3], 0  ;;  %s306_s0 = inlined_call_operand.hbm [shape: f32[8,32], index: 0, kind: input, shape index: {}]   ;;  %s307_s1 = inlined_call_operand.hbm [shape: f32[32,128], index: 1, kind: input, shape index: {}]   ;;  %s308_s2 = inlined_call_operand.hbm [shape: f32[8,128], index: 2, kind: input, shape index: {}]   ;;  %s309_s3 = inlined_call_operand.hbm [shape: f32[8,128], index: 3, kind: output, shape index: {}]  }
   0x1   :  { %9 = vsyncpa [#allocation6], 0 }
   0x2   :  { %10 = vsyncpa [#allocation4], 0  ;;  %s266_s12 = smov [#allocation5]  }
   0x3   :  { %s26_s13 = sshll.u32 %s266_s12, 4  ;;  %s27_s13 = int_to_ptr.vmem [resolvable:$true] %s26_s13 }
   0x4   :  { %s188_s14 = scalar_lea.vmem %s27_s13, 512  ;;  %p193_p1 = scmp.lt.s32.totalorder %s27_s13, %s27_s13 }
   0x5   :  { %p189_p0 = scmp.ne.s32.totalorder %s27_s13, %s188_s14  ;;  %p194_p2 = scmp.lt.s32.totalorder %s188_s14, %s188_s14 }
   0x7   :  { %p195_p3 = por %p194_p2, %p193_p1 }
   0x9   :  { %p196_p4 = pnand %p195_p3, %p189_p0 }
   0xb   :  { %199 = shalt.err (!%p196_p4)
}
   0xc   :  { %s267_s15 = smov 128   ;;  %s268_s16 = smov 8  }
   0xd   :  { %32 = dma.hbm_to_vmem [thread:$0]  %s307_s1, 512, %s27_s13, [#allocation6], %s267_s15, %s267_s15, %s268_s16  }
   0xe   :  { %s269_s19 = smov [#allocation2]   ;;  %s270_s21 = smov [#allocation7]  }
   0xf   :  { %s17_s20 = sshll.u32 %s269_s19, 4  ;;  %s39_s22 = sshll.u32 %s270_s21, 4  ;;  %s18_s20 = int_to_ptr.vmem [resolvable:$true] %s17_s20  ;;  %s40_s22 = int_to_ptr.vmem [resolvable:$true] %s39_s22 }
  0x10   :  { %s208_s23 = scalar_lea.vmem %s18_s20, 128  ;;  %p213_p6 = scmp.lt.s32.totalorder %s18_s20, %s18_s20 }
  0x11   :  { %p209_p5 = scmp.ne.s32.totalorder %s18_s20, %s208_s23  ;;  %p214_p7 = scmp.lt.s32.totalorder %s208_s23, %s208_s23 }
  0x13   :  { %p215_p8 = por %p214_p7, %p213_p6 }
  0x15   :  { %p216_p9 = pnand %p215_p8, %p209_p5 }
  0x17   :  { %219 = shalt.err (!%p216_p9)
}
  0x18   :  { %20 = dma.hbm_to_vmem [thread:$0]  %s306_s0, 128, %s18_s20, [#allocation3]  }
  0x19   :  { %s228_s26 = scalar_lea.vmem %s40_s22, 128  ;;  %p233_p11 = scmp.lt.s32.totalorder %s40_s22, %s40_s22 }
  0x1a   :  { %p229_p10 = scmp.ne.s32.totalorder %s40_s22, %s228_s26  ;;  %p234_p12 = scmp.lt.s32.totalorder %s228_s26, %s228_s26 }
  0x1c   :  { %p235_p13 = por %p234_p12, %p233_p11 }
  0x1e   :  { %p236_p0 = pnand %p235_p13, %p229_p10 }
  0x20   :  { %239 = shalt.err (!%p236_p0)
}
  0x21   :  { %42 = dma.hbm_to_vmem [thread:$0]  %s308_s2, 128, %s40_s22, [#allocation6]  }
  0x22   :  { %260 = dma.done.wait [#allocation3], 128  }
  0x23   :  { %261 = vsyncadd [#allocation3], 4294967168 }
  0x24   :  { %262 = dma.done.wait [#allocation6], 640  }
  0x25   :  { %263 = vsyncadd [#allocation6], 4294966656  ;;  %v271_v0 = vmov 0.0   ;;  %vm272_vm0 = vmmov 0   ;;  %v56_v1 = vld [vmem:[#allocation5 + $0x18] sm:$0xff]  ;;  %v55_v2 = vld [vmem:[#allocation5 + $0x10] sm:$0xff] }
  0x26   :  { %159 = vmatprep.subr.mxu0 %v271_v0  ;;  %167 = vmatprep.mubr.msk.f32.mxu0 %vm272_vm0, %v271_v0  ;;  %v54_v3 = vld [vmem:[#allocation5 + $0x8] sm:$0xff]  ;;  %v53_v4 = vld [vmem:[#allocation5] sm:$0xff]  ;;  %v52_v5 = vld [vmem:[#allocation2] sm:$0xff]  ;;  %vm58_vm1 = vcmask 261120   ;;  %s273_s0 = smov [#allocation8]  }
  0x27   :  { %160 = vmatpush3.msra.mxu0 %v56_v1  ;;  %v57_v6 = vld [vmem:[#allocation7] sm:$0xff]  ;;  %s143_s2 = sshll.u32 %s273_s0, 4  ;;  %s144_s2 = int_to_ptr.vmem [resolvable:$true] %s143_s2 }
  0x28   :  { %161 = vmatprep.subr.mxu0 %v271_v0  ;;  %s240_s28 = scalar_lea.vmem %s144_s2, 128  ;;  %p245_p2 = scmp.lt.s32.totalorder %s144_s2, %s144_s2 }
  0x29   :  { %162 = vmatpush3.msra.mxu0 %v55_v2  ;;  %p241_p1 = scmp.ne.s32.totalorder %s144_s2, %s240_s28  ;;  %p246_p3 = scmp.lt.s32.totalorder %s240_s28, %s240_s28 }
  0x2a   :  { %163 = vmatprep.subr.mxu0 %v271_v0 }
  0x2b   :  { %164 = vmatpush3.msra.mxu0 %v54_v3  ;;  %p247_p4 = por %p246_p3, %p245_p2 }
  0x2c   :  { %165 = vmatprep.subr.mxu0 %v271_v0 }
  0x2d   :  { %166 = vmatpush3.msra.mxu0 %v53_v4  ;;  %p248_p5 = pnand %p247_p4, %p241_p1 }
  0x2e   :  { %168 = vmatmul.mubr.msk.f32.vlgmr.msra.gmra.mxu0 %vm58_vm1, %v52_v5 }
  0xee   :  { %v128_v7 = vpop.f32.mrf.mxu0 }
  0xef   :  { %v129_v8 = vadd.f32 %v128_v7, %v57_v6 }
  0xf0   :  { %v169_v9 = vpop.f32.mrf.mxu0 }
  0xf1   :  { %v132_v10 = vmul.f32 0.5, %v129_v8 }
  0xf3   :  { %178 = vtanh.f32 %v132_v10 }
 0x100   :  { %v179_v11 = vpop.eup %178 }
 0x101   :  { %v134_v12 = vadd.f32 1.0, %v179_v11 }
 0x103   :  { %v135_v13 = vmul.f32 0.5, %v134_v12 }
 0x105   :  { %136 = vst [vmem:[#allocation8] sm:$0xff] %v135_v13 }
 0x106   :  { %251 = shalt.err (!%p248_p5)
}
 0x107   :  { %146 = dma.vmem_to_hbm [thread:$0]  %s144_s2, 128, %s309_s3, [#allocation4]  }
 0x108   :  { %264 = dma.done.wait [#allocation4], 128  }
 0x109   :  { %265 = vsyncadd [#allocation4], 4294967168 }
 0x10a   :  { %150 = vsyncpa [#allocation3], 1 }
 0x10b   :  { %151 = vsyncpa [#allocation6], 1 }
 0x10c   :  { %152 = vsyncpa [#allocation4], 1 }

</bundles_post_ra>
